<compile_context>
chip_gen: v7x
topology: tpu7x:2x2x1
jax: 0.10.0
libtpu: 0.0.40
codegen_flags: <defaults>
</compile_context>

<pallas_src>
import math

import jax
import jax.numpy as jnp
import numpy as np
from jax.experimental import pallas as pl
from jax.experimental.pallas import tpu as pltpu


def make_hgcn(support_len, order, c_in, c_out, n_nodes, bt_tile=None):
    c_cat = (support_len + 1) * c_in

    if bt_tile is None:
        # Smallest (batch*time) tile keeping both the x-block lane dim
        # (bt_tile*c_in) and the out-block lane dim (bt_tile*c_out) multiples
        # of 128 -> every MXU matmul and every store is lane-dense.
        bt_tile = math.lcm(128 // math.gcd(128, c_in),
                           128 // math.gcd(128, c_out))
    lane_in = bt_tile * c_in
    lane_out = bt_tile * c_out

    def kernel(x_ref, at_ref, wx_ref, wf_ref, b_ref, o_ref):
        # x_ref : (N, bt_tile*c_in)     bt_tile (batch,time) slabs, channel-minor
        # at_ref: (S, N, N)             pre-transposed adjacencies (A^T)
        # wx_ref: (bt_tile*c_in, bt_tile*c_out)           block-diag identity path
        # wf_ref: (S, order, bt_tile*c_in, bt_tile*c_out) block-diag folded W_r@Wm
        # b_ref : (1, bt_tile*c_out)
        # o_ref : (N, bt_tile*c_out)
        x = x_ref[...]
        # Identity-channel path of the 1x1-conv mlp.
        y = jnp.dot(x, wx_ref[...], preferred_element_type=jnp.float32)
        for r in range(support_len):
            a_t = at_ref[r]                                    # (N, N)
            cur = x
            for k in range(order):
                # Graph diffusion over nodes: lane-dense (N,N)@(N, bt*c_in).
                cur = jnp.dot(a_t, cur, preferred_element_type=jnp.float32)
                # Folded (W_r[r, k-block] @ Wm_r) projection, block-diagonal
                # over the bt_tile batched (b,t) slabs.
                y = y + jnp.dot(cur, wf_ref[r, k],
                                preferred_element_type=jnp.float32)
        y = y + b_ref[...]
        # dropout: identity (eval / deterministic forward)
        o_ref[...] = y.astype(o_ref.dtype)

    def forward(x_nchw, supports, w_r, w_conv, b_conv):
        B, C, N, T = x_nchw.shape
        assert C == c_in and N == n_nodes and len(supports) == support_len
        M = B * T
        n_tiles = pl.cdiv(M, bt_tile)
        m_pad = n_tiles * bt_tile

        # NCHW -> (N, B, T, c_in) -> (N, M_pad, c_in) -> (N, M_pad*c_in)
        x_nbtc = jnp.transpose(x_nchw, (2, 0, 3, 1)).reshape(N, M, c_in)
        if m_pad != M:
            x_nbtc = jnp.pad(x_nbtc, ((0, 0), (0, m_pad - M), (0, 0)))
        x2d = x_nbtc.reshape(N, m_pad * c_in)

        a_t = jnp.stack([jnp.transpose(a) for a in supports], axis=0)

        # Fold W_r into the 1x1-conv weight (associativity-equivalent), then
        # expand each (c_in, c_out) weight to a block-diagonal
        # (bt_tile*c_in, bt_tile*c_out) matrix so the batched layout needs a
        # single lane-dense matmul per (r, k).
        wm = jnp.transpose(w_conv[:, :, 0, 0], (1, 0))         # (c_cat, c_out)
        eye = jnp.eye(bt_tile, dtype=wm.dtype)
        wx_big = jnp.kron(eye, wm[support_len * c_in:, :])     # identity path
        blocks = []
        for r in range(support_len):
            wm_r = wm[r * c_in:(r + 1) * c_in, :]              # (c_in, c_out)
            row = []
            for k in range(order):
                w_fold = jnp.dot(w_r[r, k * c_in:(k + 1) * c_in, :], wm_r)
                row.append(jnp.kron(eye, w_fold))
            blocks.append(jnp.stack(row, axis=0))
        wf_big = jnp.stack(blocks, axis=0)    # (S, order, bt*c_in, bt*c_out)

        b_big = jnp.tile(b_conv, (bt_tile,)).reshape(1, lane_out)

        out2d = pl.pallas_call(
            kernel,
            out_shape=jax.ShapeDtypeStruct((N, m_pad * c_out), x_nchw.dtype),
            grid=(n_tiles,),
            in_specs=[
                pl.BlockSpec((N, lane_in), lambda m: (0, m)),
                pl.BlockSpec((support_len, N, N), lambda m: (0, 0, 0)),
                pl.BlockSpec((lane_in, lane_out), lambda m: (0, 0)),
                pl.BlockSpec((support_len, order, lane_in, lane_out),
                             lambda m: (0, 0, 0, 0)),
                pl.BlockSpec((1, lane_out), lambda m: (0, 0)),
            ],
            out_specs=pl.BlockSpec((N, lane_out), lambda m: (0, m)),
            compiler_params=pltpu.CompilerParams(
                dimension_semantics=("parallel",),
                vmem_limit_bytes=64 * 1024 * 1024),
        )(x2d, a_t, wx_big, wf_big, b_big)

        # (N, M_pad*c_out) -> drop padding -> (N, B, T, c_out) -> (B, c_out, N, T)
        out = out2d.reshape(N, m_pad, c_out)[:, :M, :].reshape(N, B, T, c_out)
        return jnp.transpose(out, (1, 3, 0, 2))

    return forward


def hgcn_reference(x, supports, w_r, w_conv, b_conv, order):
    """Plain-JAX replica of the PyTorch forward (for correctness check)."""
    out = []
    for a in supports:
        x1 = jnp.einsum('ncvl,vw->ncwl', x, a)
        out.append(x1)
        for _ in range(2, order + 1):
            x1 = jnp.einsum('ncvl,vw->ncwl', x1, a)
            out.append(x1)
    s = len(supports)
    rel_out = [jnp.concatenate(out[i * order:(i + 1) * order], axis=1)
               for i in range(s)]
    rel_out = jnp.stack(rel_out, axis=1)                    # (B, S, rel_in, N, T)
    rel_out = jnp.einsum('brvnt,rvj->brjnt', rel_out, w_r)  # (B, S, c_in, N, T)
    B = rel_out.shape[0]
    h = rel_out.reshape(B, -1, rel_out.shape[3], rel_out.shape[4])
    h = jnp.concatenate([h, x], axis=1)                     # (B, c_cat, N, T)
    y = jnp.einsum('bcnt,ocij->bont', h, w_conv) + b_conv[None, :, None, None]
    return y  # dropout identity (eval)


if __name__ == "__main__":
    # Small shapes consistent with the module: x is (B, c_in, N, T)
    B, c_in, N, T = 4, 4, 16, 16
    support_len, order, c_out = 3, 2, 8
    rel_in = order * c_in
    c_cat = (support_len + 1) * c_in

    key = jax.random.PRNGKey(0)
    kx, ka, kw, km, kb = jax.random.split(key, 5)

    x = jax.random.normal(kx, (B, c_in, N, T), jnp.float32)
    supports = [
        jax.nn.softmax(jax.random.normal(jax.random.fold_in(ka, i), (N, N),
                                         jnp.float32), axis=-1)
        for i in range(support_len)
    ]
    # Deterministic xavier-uniform-style init (shapes match the module __init__)
    bound_r = (6.0 / (rel_in + c_in)) ** 0.5
    w_r = jax.random.uniform(kw, (support_len, rel_in, c_in), jnp.float32,
                             -bound_r, bound_r)
    bound_m = (6.0 / (c_cat + c_out)) ** 0.5
    w_conv = jax.random.uniform(km, (c_out, c_cat, 1, 1), jnp.float32,
                                -bound_m, bound_m)
    b_conv = jax.random.uniform(kb, (c_out,), jnp.float32, -0.1, 0.1)

    fwd = make_hgcn(support_len, order, c_in, c_out, N)
    y = fwd(x, supports, w_r, w_conv, b_conv)
    y = jax.block_until_ready(y)

    y_ref = hgcn_reference(x, supports, w_r, w_conv, b_conv, order)
    assert y.shape == (B, c_out, N, T)
    np.testing.assert_allclose(np.asarray(y), np.asarray(y_ref),
                               rtol=1e-2, atol=1e-2)
    print("KERNEL_OK")
</pallas_src>

<mosaic_0001>
module attributes {stable_mosaic.version = 11 : i64} {
  func.func @kernel(%arg0: i32, %arg1: memref<16x128xf32, #tpu.memory_space<vmem>>, %arg2: memref<3x16x16xf32, #tpu.memory_space<vmem>>, %arg3: memref<128x256xf32, #tpu.memory_space<vmem>>, %arg4: memref<3x2x128x256xf32, #tpu.memory_space<vmem>>, %arg5: memref<1x256xf32, #tpu.memory_space<vmem>>, %arg6: memref<16x256xf32, #tpu.memory_space<vmem>>) attributes {dimension_semantics = [#tpu.dimension_semantics<parallel>], iteration_bounds = array<i64: 2>, scalar_prefetch = 0 : i64, scratch_operands = 0 : i64, tpu.core_type = #tpu.core_type<tc>, window_params = [{transform_indices = @transform_0, window_bounds = array<i64: 16, 128>}, {pipeline_mode = #tpu.pipeline_mode<synchronous>, transform_indices = @transform_1, window_bounds = array<i64: 3, 16, 16>}, {pipeline_mode = #tpu.pipeline_mode<synchronous>, transform_indices = @transform_2, window_bounds = array<i64: 128, 256>}, {pipeline_mode = #tpu.pipeline_mode<synchronous>, transform_indices = @transform_3, window_bounds = array<i64: 3, 2, 128, 256>}, {pipeline_mode = #tpu.pipeline_mode<synchronous>, transform_indices = @transform_4, window_bounds = array<i64: 1, 256>}, {transform_indices = @transform_5, window_bounds = array<i64: 16, 256>}]} {
    %c0 = arith.constant 0 : index
    %c0_0 = arith.constant 0 : index
    %0 = vector.load %arg1[%c0, %c0_0] : memref<16x128xf32, #tpu.memory_space<vmem>>, vector<16x128xf32>
    %c0_1 = arith.constant 0 : index
    %c0_2 = arith.constant 0 : index
    %1 = vector.load %arg3[%c0_1, %c0_2] : memref<128x256xf32, #tpu.memory_space<vmem>>, vector<128x256xf32>
    %cst = arith.constant dense<0.000000e+00> : vector<16x256xf32>
    %2 = tpu.matmul %0, %1, %cst {dimension_numbers = #tpu.dot_dimension_numbers<[1], [0], [0], [1], [0, 0, 1, 1], [], []>} : vector<16x128xf32>, vector<128x256xf32>, vector<16x256xf32> -> vector<16x256xf32>
    %c0_3 = arith.constant 0 : index
    %c0_4 = arith.constant 0 : index
    %c0_5 = arith.constant 0 : index
    %3 = vector.load %arg2[%c0_3, %c0_4, %c0_5] : memref<3x16x16xf32, #tpu.memory_space<vmem>>, vector<1x16x16xf32>
    %4 = vector.shape_cast %3 : vector<1x16x16xf32> to vector<16x16xf32>
    %cst_6 = arith.constant dense<0.000000e+00> : vector<16x128xf32>
    %5 = tpu.matmul %4, %0, %cst_6 {dimension_numbers = #tpu.dot_dimension_numbers<[1], [0], [0], [1], [0, 0, 1, 1], [], []>} : vector<16x16xf32>, vector<16x128xf32>, vector<16x128xf32> -> vector<16x128xf32>
    %c0_7 = arith.constant 0 : index
    %c0_8 = arith.constant 0 : index
    %c0_9 = arith.constant 0 : index
    %c0_10 = arith.constant 0 : index
    %6 = vector.load %arg4[%c0_7, %c0_8, %c0_9, %c0_10] : memref<3x2x128x256xf32, #tpu.memory_space<vmem>>, vector<1x1x128x256xf32>
    %7 = vector.shape_cast %6 : vector<1x1x128x256xf32> to vector<128x256xf32>
    %cst_11 = arith.constant dense<0.000000e+00> : vector<16x256xf32>
    %8 = tpu.matmul %5, %7, %cst_11 {dimension_numbers = #tpu.dot_dimension_numbers<[1], [0], [0], [1], [0, 0, 1, 1], [], []>} : vector<16x128xf32>, vector<128x256xf32>, vector<16x256xf32> -> vector<16x256xf32>
    %9 = arith.addf %2, %8 : vector<16x256xf32>
    %cst_12 = arith.constant dense<0.000000e+00> : vector<16x128xf32>
    %10 = tpu.matmul %4, %5, %cst_12 {dimension_numbers = #tpu.dot_dimension_numbers<[1], [0], [0], [1], [0, 0, 1, 1], [], []>} : vector<16x16xf32>, vector<16x128xf32>, vector<16x128xf32> -> vector<16x128xf32>
    %c0_13 = arith.constant 0 : index
    %c1 = arith.constant 1 : index
    %c0_14 = arith.constant 0 : index
    %c0_15 = arith.constant 0 : index
    %11 = vector.load %arg4[%c0_13, %c1, %c0_14, %c0_15] : memref<3x2x128x256xf32, #tpu.memory_space<vmem>>, vector<1x1x128x256xf32>
    %12 = vector.shape_cast %11 : vector<1x1x128x256xf32> to vector<128x256xf32>
    %cst_16 = arith.constant dense<0.000000e+00> : vector<16x256xf32>
    %13 = tpu.matmul %10, %12, %cst_16 {dimension_numbers = #tpu.dot_dimension_numbers<[1], [0], [0], [1], [0, 0, 1, 1], [], []>} : vector<16x128xf32>, vector<128x256xf32>, vector<16x256xf32> -> vector<16x256xf32>
    %14 = arith.addf %9, %13 : vector<16x256xf32>
    %c1_17 = arith.constant 1 : index
    %c0_18 = arith.constant 0 : index
    %c0_19 = arith.constant 0 : index
    %15 = vector.load %arg2[%c1_17, %c0_18, %c0_19] : memref<3x16x16xf32, #tpu.memory_space<vmem>>, vector<1x16x16xf32>
    %16 = vector.shape_cast %15 : vector<1x16x16xf32> to vector<16x16xf32>
    %cst_20 = arith.constant dense<0.000000e+00> : vector<16x128xf32>
    %17 = tpu.matmul %16, %0, %cst_20 {dimension_numbers = #tpu.dot_dimension_numbers<[1], [0], [0], [1], [0, 0, 1, 1], [], []>} : vector<16x16xf32>, vector<16x128xf32>, vector<16x128xf32> -> vector<16x128xf32>
    %c1_21 = arith.constant 1 : index
    %c0_22 = arith.constant 0 : index
    %c0_23 = arith.constant 0 : index
    %c0_24 = arith.constant 0 : index
    %18 = vector.load %arg4[%c1_21, %c0_22, %c0_23, %c0_24] : memref<3x2x128x256xf32, #tpu.memory_space<vmem>>, vector<1x1x128x256xf32>
    %19 = vector.shape_cast %18 : vector<1x1x128x256xf32> to vector<128x256xf32>
    %cst_25 = arith.constant dense<0.000000e+00> : vector<16x256xf32>
    %20 = tpu.matmul %17, %19, %cst_25 {dimension_numbers = #tpu.dot_dimension_numbers<[1], [0], [0], [1], [0, 0, 1, 1], [], []>} : vector<16x128xf32>, vector<128x256xf32>, vector<16x256xf32> -> vector<16x256xf32>
    %21 = arith.addf %14, %20 : vector<16x256xf32>
    %cst_26 = arith.constant dense<0.000000e+00> : vector<16x128xf32>
    %22 = tpu.matmul %16, %17, %cst_26 {dimension_numbers = #tpu.dot_dimension_numbers<[1], [0], [0], [1], [0, 0, 1, 1], [], []>} : vector<16x16xf32>, vector<16x128xf32>, vector<16x128xf32> -> vector<16x128xf32>
    %c1_27 = arith.constant 1 : index
    %c1_28 = arith.constant 1 : index
    %c0_29 = arith.constant 0 : index
    %c0_30 = arith.constant 0 : index
    %23 = vector.load %arg4[%c1_27, %c1_28, %c0_29, %c0_30] : memref<3x2x128x256xf32, #tpu.memory_space<vmem>>, vector<1x1x128x256xf32>
    %24 = vector.shape_cast %23 : vector<1x1x128x256xf32> to vector<128x256xf32>
    %cst_31 = arith.constant dense<0.000000e+00> : vector<16x256xf32>
    %25 = tpu.matmul %22, %24, %cst_31 {dimension_numbers = #tpu.dot_dimension_numbers<[1], [0], [0], [1], [0, 0, 1, 1], [], []>} : vector<16x128xf32>, vector<128x256xf32>, vector<16x256xf32> -> vector<16x256xf32>
    %26 = arith.addf %21, %25 : vector<16x256xf32>
    %c2 = arith.constant 2 : index
    %c0_32 = arith.constant 0 : index
    %c0_33 = arith.constant 0 : index
    %27 = vector.load %arg2[%c2, %c0_32, %c0_33] : memref<3x16x16xf32, #tpu.memory_space<vmem>>, vector<1x16x16xf32>
    %28 = vector.shape_cast %27 : vector<1x16x16xf32> to vector<16x16xf32>
    %cst_34 = arith.constant dense<0.000000e+00> : vector<16x128xf32>
    %29 = tpu.matmul %28, %0, %cst_34 {dimension_numbers = #tpu.dot_dimension_numbers<[1], [0], [0], [1], [0, 0, 1, 1], [], []>} : vector<16x16xf32>, vector<16x128xf32>, vector<16x128xf32> -> vector<16x128xf32>
    %c2_35 = arith.constant 2 : index
    %c0_36 = arith.constant 0 : index
    %c0_37 = arith.constant 0 : index
    %c0_38 = arith.constant 0 : index
    %30 = vector.load %arg4[%c2_35, %c0_36, %c0_37, %c0_38] : memref<3x2x128x256xf32, #tpu.memory_space<vmem>>, vector<1x1x128x256xf32>
    %31 = vector.shape_cast %30 : vector<1x1x128x256xf32> to vector<128x256xf32>
    %cst_39 = arith.constant dense<0.000000e+00> : vector<16x256xf32>
    %32 = tpu.matmul %29, %31, %cst_39 {dimension_numbers = #tpu.dot_dimension_numbers<[1], [0], [0], [1], [0, 0, 1, 1], [], []>} : vector<16x128xf32>, vector<128x256xf32>, vector<16x256xf32> -> vector<16x256xf32>
    %33 = arith.addf %26, %32 : vector<16x256xf32>
    %cst_40 = arith.constant dense<0.000000e+00> : vector<16x128xf32>
    %34 = tpu.matmul %28, %29, %cst_40 {dimension_numbers = #tpu.dot_dimension_numbers<[1], [0], [0], [1], [0, 0, 1, 1], [], []>} : vector<16x16xf32>, vector<16x128xf32>, vector<16x128xf32> -> vector<16x128xf32>
    %c2_41 = arith.constant 2 : index
    %c1_42 = arith.constant 1 : index
    %c0_43 = arith.constant 0 : index
    %c0_44 = arith.constant 0 : index
    %35 = vector.load %arg4[%c2_41, %c1_42, %c0_43, %c0_44] : memref<3x2x128x256xf32, #tpu.memory_space<vmem>>, vector<1x1x128x256xf32>
    %36 = vector.shape_cast %35 : vector<1x1x128x256xf32> to vector<128x256xf32>
    %cst_45 = arith.constant dense<0.000000e+00> : vector<16x256xf32>
    %37 = tpu.matmul %34, %36, %cst_45 {dimension_numbers = #tpu.dot_dimension_numbers<[1], [0], [0], [1], [0, 0, 1, 1], [], []>} : vector<16x128xf32>, vector<128x256xf32>, vector<16x256xf32> -> vector<16x256xf32>
    %38 = arith.addf %33, %37 : vector<16x256xf32>
    %c0_46 = arith.constant 0 : index
    %c0_47 = arith.constant 0 : index
    %39 = vector.load %arg5[%c0_46, %c0_47] : memref<1x256xf32, #tpu.memory_space<vmem>>, vector<1x256xf32>
    %40 = vector.broadcast %39 : vector<1x256xf32> to vector<16x256xf32>
    %41 = arith.addf %38, %40 : vector<16x256xf32>
    %c0_48 = arith.constant 0 : index
    %c0_49 = arith.constant 0 : index
    %42 = vector.load %arg6[%c0_48, %c0_49] : memref<16x256xf32, #tpu.memory_space<vmem>>, vector<16x256xf32>
    tpu.vector_store %arg6[%c0_48, %c0_49], %41 {strides = array<i32>} : memref<16x256xf32, #tpu.memory_space<vmem>>, vector<16x256xf32>,
    return
  }
  func.func @transform_0(%arg0: i32) -> (i32, i32) {
    %c0_i32 = arith.constant 0 : i32
    %c0_i32_0 = arith.constant 0 : i32
    return %c0_i32, %arg0 : i32, i32
  }
  func.func @transform_1(%arg0: i32) -> (i32, i32, i32) {
    %c0_i32 = arith.constant 0 : i32
    %c0_i32_0 = arith.constant 0 : i32
    %c0_i32_1 = arith.constant 0 : i32
    %c0_i32_2 = arith.constant 0 : i32
    return %c0_i32, %c0_i32_0, %c0_i32_1 : i32, i32, i32
  }
  func.func @transform_2(%arg0: i32) -> (i32, i32) {
    %c0_i32 = arith.constant 0 : i32
    %c0_i32_0 = arith.constant 0 : i32
    %c0_i32_1 = arith.constant 0 : i32
    return %c0_i32, %c0_i32_0 : i32, i32
  }
  func.func @transform_3(%arg0: i32) -> (i32, i32, i32, i32) {
    %c0_i32 = arith.constant 0 : i32
    %c0_i32_0 = arith.constant 0 : i32
    %c0_i32_1 = arith.constant 0 : i32
    %c0_i32_2 = arith.constant 0 : i32
    %c0_i32_3 = arith.constant 0 : i32
    return %c0_i32, %c0_i32_0, %c0_i32_1, %c0_i32_2 : i32, i32, i32, i32
  }
  func.func @transform_4(%arg0: i32) -> (i32, i32) {
    %c0_i32 = arith.constant 0 : i32
    %c0_i32_0 = arith.constant 0 : i32
    %c0_i32_1 = arith.constant 0 : i32
    return %c0_i32, %c0_i32_0 : i32, i32
  }
  func.func @transform_5(%arg0: i32) -> (i32, i32) {
    %c0_i32 = arith.constant 0 : i32
    %c0_i32_0 = arith.constant 0 : i32
    return %c0_i32, %arg0 : i32, i32
  }
}

</mosaic_0001>

<bundles_post_ra>
// kernel: tpu_custom_call.1
= control target key start
LH: loop header
LB: loop body
LE: loop exit
PB: predicated region body
PF: predicated region fallthrough
CT: control target
= control target key end

     0   :  { %10 = vsyncpa [#allocation3], 0  ;;  %s2785_s0 = inlined_call_operand.hbm [shape: f32[16,256], index: 0, kind: input, shape index: {}]   ;;  %s2786_s1 = inlined_call_operand.hbm [shape: f32[3,16,16], index: 1, kind: input, shape index: {}]   ;;  %s2787_s2 = inlined_call_operand.hbm [shape: f32[128,256], index: 2, kind: input, shape index: {}]   ;;  %s2788_s3 = inlined_call_operand.hbm [shape: f32[3,2,128,256], index: 3, kind: input, shape index: {}]   ;;  %s2789_s4 = inlined_call_operand.hbm [shape: f32[1,256], index: 4, kind: input, shape index: {}]   ;;  %s2790_s5 = inlined_call_operand.hbm [shape: f32[16,512], index: 5, kind: output, shape index: {}]  }
   0x1   :  { %12 = vsyncpa [#allocation3 + $0x1], 0 }
   0x2   :  { %13 = vsyncpa [#allocation6], 0 }
   0x3   :  { %14 = vsyncpa [#allocation9], 0 }
   0x4   :  { %15 = vsyncpa [#allocation4], 0 }
   0x5   :  { %17 = vsyncpa [#allocation4 + $0x1], 0  ;;  %s2440_s18 = smov 0   ;;  %s2442_s19 = smov 0  }
   0x6   :  { %s2444_s20 = smov 0   ;;  %s2446_s21 = smov 0  }
   0x7 LB: > { %s2461_s22 = sadd.s32 4294967295, %s2394_s21   ;;  %s1711_s23 = sadd.s32 4294967294, %s2394_s21   ;;  %s2394_s21 = sphi %s2446_s21, %s2815_s21   ;;  %s2390_s20 = sphi %s2444_s20, %s2814_s20   ;;  %s2386_s19 = sphi %s2442_s19, %s2813_s19   ;;  %s2382_s18 = sphi %s2440_s18, %s2812_s18  }
   0x8   : > { %p43_p0 = scmp.ne.s32.totalorder %s2386_s19, %s2382_s18  ;;  %p2791_p1 = scmp.eq.s32.totalorder %s2461_s22, 0 }
   0x9   : > { %p157_p3 = scmp.eq.s32.totalorder %s1711_s23, 1  ;;  %p1712_p5 = scmp.ge.s32.totalorder %s2394_s21, 1 }
   0xa   : > { %p2470_p4 = por %p2791_p1, %p43_p0  ;;  %p164_p7 = scmp.lt.s32.totalorder %s2394_s21, 3 }
   0xb   : > { %p2475_p6 = por %p157_p3, %p43_p0  ;;  %s2396_s27 = smov [#allocation5]  }
   0xc   : > { %s2795_s24 = scalar_select %p2470_p4, 1, 0 }
   0xd   : > { %s2796_s25 = scalar_select %p2475_p6, 1, 0 }
   0xe   : > { %p2480_p8 = pnand %p1712_p5, %p164_p7  ;;  %s176_s28 = sshll.u32 %s2396_s27, 4  ;;  %s177_s28 = int_to_ptr.vmem [resolvable:$true] %s176_s28 }
   0xf   : > { %s2397_s30 = smov [#allocation8]   ;;  %s2178_s9 = scalar_lea.hbm %s2786_s1, 768 }
  0x10   : > { %s2797_s26 = scalar_select %p2480_p8, 1, 0 }
  0x11   : > { %p2103_p9 = pneg %p2480_p8  ;;  %s202_s6 = sshll.u32 %s2397_s30, 4  ;;  %s203_s6 = int_to_ptr.vmem [resolvable:$true] %s202_s6 }
  0x12   : > { %p2179_p12 = scmp.ne.s32.totalorder %s2786_s1, %s2178_s9  ;;  %p2185_p5 = scmp.lt.u32.totalorder %s2178_s9, %s2786_s1 }
  0x13   : > { %p2489_p11 = pnand %p2103_p9, %p2791_p1 }
  0x15   : > { %p2501_p13 = pneg %p2489_p11 }
  0x17   : > { %p2181_p0 = pnand %p2501_p13, %p2179_p12 }
  0x19   : > { %p2182_p3 = pneg %p2181_p0 }
  0x1b   : > { %p2187_p7 = pnand %p2185_p5, %p2182_p3 }
  0x1d   : > { %2190 = shalt.err (!%p2187_p7)
}
  0x1e   : > { %s2191_s15 = scalar_lea.vmem %s177_s28, 768  ;;  %p2199_p2 = scmp.lt.s32.totalorder %s177_s28, %s177_s28 }
  0x1f   : > { %p2192_p9 = scmp.ne.s32.totalorder %s177_s28, %s2191_s15  ;;  %p2200_p6 = scmp.lt.s32.totalorder %s2191_s15, %s2191_s15 }
  0x21   : > { %p2194_p10 = pnand %p2192_p9, %p2501_p13  ;;  %p2201_p4 = por %p2200_p6, %p2199_p2 }
  0x23   : > { %p2195_p1 = pneg %p2194_p10 }
  0x25   : > { %p2202_p8 = pnand %p2201_p4, %p2195_p1 }
  0x27   : > { %2205 = shalt.err (!%p2202_p8)
}
  0x28   : > { %s2794_s16 = smov 128   ;;  %s2399_s17 = smov 8  }
  0x29   : > { %2106 = dma.hbm_to_vmem [thread:$0]  (!%p2489_p11), %s2786_s1, 768, %s177_s28, [#allocation6], %s2794_s16, %s2794_s16, %s2399_s17  }
  0x2a   : > { %s2400_s30 = smov [#allocation7]   ;;  %s2206_s10 = scalar_lea.hbm %s2788_s3, 24576 }
  0x2b   : > { %s189_s7 = sshll.u32 %s2400_s30, 4  ;;  %p2207_p1 = scmp.ne.s32.totalorder %s2788_s3, %s2206_s10  ;;  %s190_s7 = int_to_ptr.vmem [resolvable:$true] %s189_s7 }
  0x2c   : > { %p2213_p6 = scmp.lt.u32.totalorder %s2206_s10, %s2788_s3 }
  0x2d   : > { %p2209_p2 = pnand %p2207_p1, %p2501_p13 }
  0x2f   : > { %p2210_p4 = pneg %p2209_p2 }
  0x31   : > { %p2215_p8 = pnand %p2213_p6, %p2210_p4 }
  0x33   : > { %2218 = shalt.err (!%p2215_p8)
}
  0x34   : > { %s2219_s28 = scalar_lea.vmem %s203_s6, 24576  ;;  %p2227_p3 = scmp.lt.s32.totalorder %s203_s6, %s203_s6 }
  0x35   : > { %p2220_p10 = scmp.ne.s32.totalorder %s203_s6, %s2219_s28  ;;  %p2228_p5 = scmp.lt.s32.totalorder %s2219_s28, %s2219_s28 }
  0x37   : > { %p2222_p12 = pnand %p2220_p10, %p2501_p13  ;;  %p2229_p7 = por %p2228_p5, %p2227_p3 }
  0x39   : > { %p2223_p0 = pneg %p2222_p12 }
  0x3b   : > { %p2230_p9 = pnand %p2229_p7, %p2223_p0 }
  0x3d   : > { %2233 = shalt.err (!%p2230_p9)
}
  0x3e   : > { %s2401_s23 = smov 256   ;;  %s2402_s27 = smov 16  }
  0x3f   : > { %2112 = dma.hbm_to_vmem [thread:$0]  (!%p2489_p11), %s2788_s3, 24576, %s203_s6, [#allocation9], %s2401_s23, %s2401_s23, %s2402_s27  }
  0x40   : > { %s2234_s11 = scalar_lea.hbm %s2787_s2, 4096 }
  0x41   : > { %p2235_p1 = scmp.ne.s32.totalorder %s2787_s2, %s2234_s11  ;;  %p2241_p6 = scmp.lt.u32.totalorder %s2234_s11, %s2787_s2 }
  0x43   : > { %p2237_p2 = pnand %p2235_p1, %p2501_p13 }
  0x45   : > { %p2238_p4 = pneg %p2237_p2 }
  0x47   : > { %p2243_p8 = pnand %p2241_p6, %p2238_p4 }
  0x49   : > { %2246 = shalt.err (!%p2243_p8)
}
  0x4a   : > { %s2247_s30 = scalar_lea.vmem %s190_s7, 4096  ;;  %p2255_p3 = scmp.lt.s32.totalorder %s190_s7, %s190_s7 }
  0x4b   : > { %p2248_p10 = scmp.ne.s32.totalorder %s190_s7, %s2247_s30  ;;  %p2256_p5 = scmp.lt.s32.totalorder %s2247_s30, %s2247_s30 }
  0x4d   : > { %p2250_p12 = pnand %p2248_p10, %p2501_p13  ;;  %p2257_p7 = por %p2256_p5, %p2255_p3 }
  0x4f   : > { %p2251_p0 = pneg %p2250_p12 }
  0x51   : > { %p2258_p9 = pnand %p2257_p7, %p2251_p0 }
  0x53   : > { %2261 = shalt.err (!%p2258_p9)
}
  0x54   : > { %2109 = dma.hbm_to_vmem [thread:$0]  (!%p2489_p11), %s2787_s2, 4096, %s190_s7, [#allocation6], %s2401_s23, %s2401_s23, %s2402_s27  }
  0x55   : > { %s2403_s9 = smov [#allocation10]   ;;  %s2262_s14 = scalar_lea.hbm %s2789_s4, 32 }
  0x56   : > { %s216_s10 = sshll.u32 %s2403_s9, 4  ;;  %p2263_p1 = scmp.ne.s32.totalorder %s2789_s4, %s2262_s14  ;;  %s217_s10 = int_to_ptr.vmem [resolvable:$true] %s216_s10 }
  0x57   : > { %p2269_p6 = scmp.lt.u32.totalorder %s2262_s14, %s2789_s4 }
  0x58   : > { %p2265_p2 = pnand %p2263_p1, %p2501_p13 }
  0x5a   : > { %p2266_p4 = pneg %p2265_p2 }
  0x5c   : > { %p2271_p8 = pnand %p2269_p6, %p2266_p4 }
  0x5e   : > { %2274 = shalt.err (!%p2271_p8)
}
  0x5f   : > { %s2275_s7 = scalar_lea.vmem %s217_s10, 32  ;;  %p2283_p3 = scmp.lt.s32.totalorder %s217_s10, %s217_s10 }
  0x60   : > { %p2276_p10 = scmp.ne.s32.totalorder %s217_s10, %s2275_s7  ;;  %p2284_p5 = scmp.lt.s32.totalorder %s2275_s7, %s2275_s7 }
  0x62   : > { %p2278_p12 = pnand %p2276_p10, %p2501_p13  ;;  %p2285_p7 = por %p2284_p5, %p2283_p3 }
  0x64   : > { %p2279_p0 = pneg %p2278_p12 }
  0x66   : > { %p2286_p9 = pnand %p2285_p7, %p2279_p0 }
  0x68   : > { %2289 = shalt.err (!%p2286_p9)
}
  0x69   : > { %2115 = dma.hbm_to_vmem [thread:$0]  (!%p2489_p11), %s2789_s4, 32, %s217_s10, [#allocation9]  }
  0x6a   : > { %s2579_s12 = sadd.s32 1, %s2394_s21   ;;  %s30_s16 = sadd.s32 1, %s2390_s20 }
  0x6b   : > { %s27_s29 = ssub.s32 %s2394_s21, %s2579_s12  ;;  %p37_p13 = scmp.ne.s32.totalorder %s2390_s20, %s2386_s19 }
  0x6c   : > { %p28_p1 = scmp.eq.s32.totalorder %s27_s29, 0  ;;  %p38_p2 = scmp.eq.s32.totalorder %s2394_s21, 0 }
  0x6d   : > { %p2800_p4 = scmp.eq.s32.totalorder %s2461_s22, 1  ;;  %p2128_p8 = scmp.lt.s32.totalorder %s2394_s21, 2 }
  0x6e   : > { %s2595_s9 = scalar_select %p28_p1, %s2390_s20, %s30_s16  }
  0x6f   : > { %p2589_p6 = por %p2800_p4, %p37_p13  ;;  %p39_p10 = por %p38_p2, %p37_p13 }
  0x70   : > { %s227_s11 = sand.u32 1, %s2390_s20   ;;  %s1719_s10 = sshll.u32 %s2394_s21, 7 }
  0x71   : > { %s1718_s13 = sshll.u32 %s227_s11, 4  ;;  %s2602_s28 = scalar_lea.hbm %s2785_s0, %s1719_s10 }
  0x72   : > { %s231_s30 = scalar_lea.vmem [#allocation2], %s1718_s13  ;;  %p2606_p11 = pnand %p2128_p8, %p39_p10 }
  0x73   : > { %s237_s7 = sshll.u32 %s231_s30, 4  ;;  %s2610_s6 = scalar_lea.sflag [#allocation3], %s227_s11  ;;  %s2604_s7 = int_to_ptr.vmem [resolvable:$true] %s237_s7 }
  0x74   : > { %s2290_s16 = scalar_lea.hbm %s2602_s28, 256  ;;  %p2292_p0 = pneg %p2606_p11 }
  0x75   : > { %p2291_p12 = scmp.ne.s32.totalorder %s2602_s28, %s2290_s16  ;;  %s2295_s10 = scalar_lea.hbm %s2785_s0, 512 }
  0x76   : > { %p2296_p7 = scmp.lt.u32.totalorder %s2602_s28, %s2785_s0  ;;  %p2297_p9 = scmp.lt.u32.totalorder %s2295_s10, %s2290_s16 }
  0x77   : > { %p2293_p3 = pnand %p2292_p0, %p2291_p12  ;;  %p2299_p1 = scmp.lt.u32.totalorder %s2290_s16, %s2602_s28 }
  0x78   : > { %p2298_p13 = por %p2297_p9, %p2296_p7 }
  0x79   : > { %p2294_p5 = pneg %p2293_p3 }
  0x7a   : > { %p2300_p2 = por %p2299_p1, %p2298_p13 }
  0x7c   : > { %p2301_p4 = pnand %p2300_p2, %p2294_p5 }
  0x7e   : > { %2304 = shalt.err (!%p2301_p4)
}
  0x7f   : > { %s2305_s11 = scalar_lea.vmem %s2604_s7, 256  ;;  %s2404_s30 = smov [#allocation2]  }
  0x80   : > { %p2306_p8 = scmp.ne.s32.totalorder %s2604_s7, %s2305_s11  ;;  %s2310_s29 = sshll.u32 %s2404_s30, 4  ;;  %s2311_s29 = int_to_ptr.vmem [resolvable:$false] %s2310_s29 }
  0x81   : > { %s2312_s13 = scalar_lea.vmem %s2311_s29, 512  ;;  %p2313_p3 = scmp.lt.s32.totalorder %s2604_s7, %s2311_s29 }
  0x82   : > { %p2308_p10 = pnand %p2306_p8, %p2292_p0  ;;  %p2314_p7 = scmp.lt.s32.totalorder %s2312_s13, %s2305_s11 }
  0x84   : > { %p2309_p12 = pneg %p2308_p10  ;;  %p2315_p9 = por %p2314_p7, %p2313_p3 }
  0x86   : > { %p2316_p13 = pnand %p2315_p9, %p2309_p12 }
  0x88   : > { %2319 = shalt.err (!%p2316_p13)
}
  0x89   : > { %s2803_s16 = smov 128   ;;  %p2804_p0 = scmp.ne.s32.totalorder %s2797_s26, 0 }
  0x8a   : > { %2119 = dma.hbm_to_vmem [thread:$0]  (!%p2606_p11), %s2602_s28, 256, %s2604_s7, %s2610_s6, %s2401_s23, %s2803_s16, %s2399_s17  }
  0x8b   : > { %249 = sbr.rel (%p2804_p0) target bundleno = 1526 (0x5f6), region = 40  ;;  %s2644_s10 = sand.u32 (!%p2804_p0), 1, %s2386_s19  }
  0x8c   : > { %s1721_s14 = sshll.u32 (!%p2804_p0), %s2644_s10, 4  ;;  %s252_s15 = scalar_lea.sflag (!%p2804_p0), [#allocation3], %s2644_s10 }
  0x8d   : > { %s255_s11 = scalar_lea.vmem (!%p2804_p0), [#allocation2], %s1721_s14  ;;  %p2805_p5 = scmp.ne.s32.totalorder (!%p2804_p0), %s2795_s24, 0 }
  0x92   : > { %2365 = dma.done.wait (%p2805_p5), %s252_s15, 256  }
  0x93   : > { %2367 = vsyncadd (%p2805_p5), %s252_s15, 4294967040  ;;  %p2806_p1 = scmp.eq.s32.totalorder %s2461_s22, 0 }
  0x95   : > { %2369 = dma.done.wait (%p2806_p1), [#allocation6], 4864   ;;  %p2807_p11 = pmov %p2806_p1 }
  0x96   : > { %p2808_p2 = pmov %p2806_p1 }
  0x97   : > { %2371 = vsyncadd (%p2807_p11), [#allocation6], 4294962432 }
  0x98   : > { %2373 = dma.done.wait (%p2808_p2), [#allocation9], 24608   ;;  %p2809_p4 = pmov %p2806_p1 }
  0x99   : > { %vm335_vm0 = vcmask 130048   ;;  %v2660_v0 = vld [vmem:[%s255_s11] sm:$0xff]  ;;  %v2662_v1 = vld [vmem:[%s255_s11 + $0x8] sm:$0xff]  ;;  %v2405_v56 = vmov 0.0   ;;  %s1726_s24 = sshll.u32 %s2644_s10, 5  ;;  %s1744_s23 = sshll.u32 %s2461_s22, 8 }
  0x9a   : > { %2375 = vsyncadd (%p2809_p4), [#allocation9], 4294942688  ;;  %v2664_v2 = vld [vmem:[#allocation5] sm:$0xff]  ;;  %v2668_v3 = vpack.c.bf16 %v2662_v1, %v2660_v0  ;;  %v418_v4 = vld [vmem:[#allocation8 + $0x8] sm:$0xff]  ;;  %973 = vmatprep.mubr.f32.mxu1 %v2405_v56  ;;  %s297_s26 = scalar_lea.vmem [#allocation11], %s1726_s24  ;;  %s2741_s27 = scalar_lea.hbm %s2790_s5, %s1744_s23 }
  0x9b   : > { %1773 = vmatprep.mubr.msk.f32.mxu0 %vm335_vm0, %v2664_v2  ;;  %v420_v5 = vld [vmem:[#allocation8 + $0x18] sm:$0xff]  ;;  %v417_v7 = vld [vmem:[#allocation8] sm:$0xff]  ;;  %v419_v8 = vld [vmem:[#allocation8 + $0x10] sm:$0xff]  ;;  %s1600_s17 = sshll.u32 %s297_s26, 4  ;;  %s1587_s22 = scalar_lea.sflag [#allocation4], %s2644_s10  ;;  %s2735_s17 = int_to_ptr.vmem [resolvable:$true] %s1600_s17 }
  0x9c   : > { %v1815_v6 = vpack.c.bf16 %v420_v5, %v418_v4  ;;  %v422_v9 = vld [vmem:[#allocation8 + $0x28] sm:$0xff]  ;;  %1812 = vmatprep.subr.bf16.mxu0 %v2668_v3  ;;  %v424_v10 = vld [vmem:[#allocation8 + $0x38] sm:$0xff]  ;;  %v1817_v12 = vpack.c.bf16 %v419_v8, %v417_v7  ;;  %v421_v14 = vld [vmem:[#allocation8 + $0x20] sm:$0xff]  ;;  %s2320_s6 = scalar_lea.vmem %s2735_s17, 512  ;;  %s2406_s30 = smov [#allocation11]  }
  0x9d   : > { %1814 = vmatpush3.bf16.msra.mxu0 %v2668_v3  ;;  %v2674_v11 = vld [vmem:[#allocation5 + $0x8] sm:$0xff]  ;;  %v1819_v13 = vpack.c.bf16 %v424_v10, %v422_v9  ;;  %v423_v15 = vld [vmem:[#allocation8 + $0x30] sm:$0xff]  ;;  %v426_v16 = vld [vmem:[#allocation8 + $0x48] sm:$0xff]  ;;  %p2321_p8 = scmp.ne.s32.totalorder %s2735_s17, %s2320_s6  ;;  %s2324_s29 = sshll.u32 %s2406_s30, 4  ;;  %s2325_s29 = int_to_ptr.vmem [resolvable:$false] %s2324_s29 }
  0x9e   : > { %1816 = vmatprep.subr.bf16.mxu0 %v1815_v6  ;;  %v428_v17 = vld [vmem:[#allocation8 + $0x58] sm:$0xff]  ;;  %v1821_v18 = vpack.c.bf16 %v423_v15, %v421_v14  ;;  %v425_v20 = vld [vmem:[#allocation8 + $0x40] sm:$0xff]  ;;  %v427_v21 = vld [vmem:[#allocation8 + $0x50] sm:$0xff]  ;;  %s2326_s13 = scalar_lea.vmem %s2325_s29, 1024  ;;  %p2327_p3 = scmp.lt.s32.totalorder %s2735_s17, %s2325_s29 }
  0x9f   : > { %v1823_v19 = vpack.c.bf16 %v428_v17, %v426_v16  ;;  %v430_v22 = vld [vmem:[#allocation8 + $0x68] sm:$0xff]  ;;  %v432_v23 = vld [vmem:[#allocation8 + $0x78] sm:$0xff]  ;;  %v1825_v24 = vpack.c.bf16 %v427_v21, %v425_v20  ;;  %v429_v26 = vld [vmem:[#allocation8 + $0x60] sm:$0xff]  ;;  %p2322_p10 = pnand %p2321_p8, %p2589_p6  ;;  %p2328_p7 = scmp.lt.s32.totalorder %s2326_s13, %s2320_s6 }
  0xa0   : > { %1774 = vmatmul.mubr.msk.f32.vlgmr.msra.gmra.mrb[0].mxu0 %vm335_vm0, %v2674_v11  ;;  %v1827_v25 = vpack.c.bf16 %v432_v23, %v430_v22  ;;  %v431_v27 = vld [vmem:[#allocation8 + $0x70] sm:$0xff]  ;;  %v434_v28 = vld [vmem:[#allocation8 + $0x88] sm:$0xff]  ;;  %v436_v29 = vld [vmem:[#allocation8 + $0x98] sm:$0xff] }
  0xa1   : > { %1818 = vmatpush1.bf16.msra.mxu0 %v1817_v12  ;;  %v1829_v30 = vpack.c.bf16 %v431_v27, %v429_v26  ;;  %v1831_v31 = vpack.c.bf16 %v436_v29, %v434_v28  ;;  %v433_v32 = vld [vmem:[#allocation8 + $0x80] sm:$0xff]  ;;  %v435_v33 = vld [vmem:[#allocation8 + $0x90] sm:$0xff]  ;;  %v438_v34 = vld [vmem:[#allocation8 + $0xa8] sm:$0xff]  ;;  %513 = vmatprep.mubr.f32.mxu0 %v2405_v56  ;;  %p2323_p12 = pneg %p2322_p10  ;;  %p2329_p9 = por %p2328_p7, %p2327_p3 }
  0xa2   : > { %1820 = vmatprep.subr.bf16.mxu0 %v1819_v13  ;;  %v440_v35 = vld [vmem:[#allocation8 + $0xb8] sm:$0xff]  ;;  %v1833_v36 = vpack.c.bf16 %v435_v33, %v433_v32  ;;  %v437_v38 = vld [vmem:[#allocation8 + $0xa0] sm:$0xff]  ;;  %v439_v39 = vld [vmem:[#allocation8 + $0xb0] sm:$0xff] }
  0xa3   : > { %v1835_v37 = vpack.c.bf16 %v440_v35, %v438_v34  ;;  %v442_v40 = vld [vmem:[#allocation8 + $0xc8] sm:$0xff]  ;;  %v444_v41 = vld [vmem:[#allocation8 + $0xd8] sm:$0xff]  ;;  %v1837_v42 = vpack.c.bf16 %v439_v39, %v437_v38  ;;  %v441_v44 = vld [vmem:[#allocation8 + $0xc0] sm:$0xff]  ;;  %p2330_p13 = pnand %p2329_p9, %p2323_p12 }
  0xa4   : > { %v1839_v43 = vpack.c.bf16 %v444_v41, %v442_v40  ;;  %v443_v45 = vld [vmem:[#allocation8 + $0xd0] sm:$0xff]  ;;  %v446_v46 = vld [vmem:[#allocation8 + $0xe8] sm:$0xff]  ;;  %v448_v47 = vld [vmem:[#allocation8 + $0xf8] sm:$0xff] }
  0xa5   : > { %1822 = vmatpush1.bf16.msra.mxu0 %v1821_v18  ;;  %v1841_v48 = vpack.c.bf16 %v443_v45, %v441_v44  ;;  %v1843_v49 = vpack.c.bf16 %v448_v47, %v446_v46  ;;  %v445_v50 = vld [vmem:[#allocation8 + $0xe0] sm:$0xff]  ;;  %v447_v51 = vld [vmem:[#allocation8 + $0xf0] sm:$0xff]  ;;  %v302_v53 = vld [vmem:[#allocation7 + $0x8] sm:$0xff] }
  0xa6   : > { %1824 = vmatprep.subr.bf16.mxu0 %v1823_v19  ;;  %v1845_v52 = vpack.c.bf16 %v447_v51, %v445_v50  ;;  %v304_v54 = vld [vmem:[#allocation7 + $0x18] sm:$0xff]  ;;  %v301_v57 = vld [vmem:[#allocation7] sm:$0xff]  ;;  %v303_v58 = vld [vmem:[#allocation7 + $0x10] sm:$0xff] }
  0xa7   : > { %v1847_v55 = vpack.c.bf16 %v304_v54, %v302_v53  ;;  %v306_v59 = vld [vmem:[#allocation7 + $0x28] sm:$0xff]  ;;  %v308_v60 = vld [vmem:[#allocation7 + $0x38] sm:$0xff]  ;;  %v1849_v61 = vpack.c.bf16 %v303_v58, %v301_v57  ;;  %v305_v4 = vld [vmem:[#allocation7 + $0x20] sm:$0xff] }
  0xa8   : > { %v1851_v63 = vpack.c.bf16 %v308_v60, %v306_v59  ;;  %v307_v5 = vld [vmem:[#allocation7 + $0x30] sm:$0xff]  ;;  %v310_v7 = vld [vmem:[#allocation7 + $0x48] sm:$0xff]  ;;  %v312_v8 = vld [vmem:[#allocation7 + $0x58] sm:$0xff] }
  0xa9   : > { %1826 = vmatpush1.bf16.msra.mxu0 %v1825_v24  ;;  %v1853_v10 = vpack.c.bf16 %v307_v5, %v305_v4  ;;  %v1855_v12 = vpack.c.bf16 %v312_v8, %v310_v7  ;;  %v309_v13 = vld [vmem:[#allocation7 + $0x40] sm:$0xff]  ;;  %v311_v14 = vld [vmem:[#allocation7 + $0x50] sm:$0xff]  ;;  %v314_v15 = vld [vmem:[#allocation7 + $0x68] sm:$0xff] }
  0xaa   : > { %1828 = vmatprep.subr.bf16.mxu0 %v1827_v25  ;;  %v316_v16 = vld [vmem:[#allocation7 + $0x78] sm:$0xff]  ;;  %v1857_v17 = vpack.c.bf16 %v311_v14, %v309_v13  ;;  %v313_v19 = vld [vmem:[#allocation7 + $0x60] sm:$0xff]  ;;  %v315_v20 = vld [vmem:[#allocation7 + $0x70] sm:$0xff] }
  0xab   : > { %v1859_v18 = vpack.c.bf16 %v316_v16, %v314_v15  ;;  %v318_v21 = vld [vmem:[#allocation7 + $0x88] sm:$0xff]  ;;  %v320_v22 = vld [vmem:[#allocation7 + $0x98] sm:$0xff]  ;;  %v1861_v23 = vpack.c.bf16 %v315_v20, %v313_v19  ;;  %v317_v25 = vld [vmem:[#allocation7 + $0x80] sm:$0xff] }
  0xac   : > { %v1863_v24 = vpack.c.bf16 %v320_v22, %v318_v21  ;;  %v319_v26 = vld [vmem:[#allocation7 + $0x90] sm:$0xff]  ;;  %v322_v27 = vld [vmem:[#allocation7 + $0xa8] sm:$0xff]  ;;  %v324_v28 = vld [vmem:[#allocation7 + $0xb8] sm:$0xff] }
  0xad   : > { %1830 = vmatpush1.bf16.msra.mxu0 %v1829_v30  ;;  %v1865_v29 = vpack.c.bf16 %v319_v26, %v317_v25  ;;  %v1867_v30 = vpack.c.bf16 %v324_v28, %v322_v27  ;;  %v323_v32 = vld [vmem:[#allocation7 + $0xb0] sm:$0xff]  ;;  %v326_v33 = vld [vmem:[#allocation7 + $0xc8] sm:$0xff]  ;;  %v328_v34 = vld [vmem:[#allocation7 + $0xd8] sm:$0xff] }
  0xae   : > { %1832 = vmatprep.subr.bf16.mxu0 %v1831_v31  ;;  %v321_v31 = vld [vmem:[#allocation7 + $0xa0] sm:$0xff]  ;;  %v327_v38 = vld [vmem:[#allocation7 + $0xd0] sm:$0xff]  ;;  %v330_v39 = vld [vmem:[#allocation7 + $0xe8] sm:$0xff] }
  0xaf   : > { %v1869_v35 = vpack.c.bf16 %v323_v32, %v321_v31  ;;  %v332_v40 = vld [vmem:[#allocation7 + $0xf8] sm:$0xff]  ;;  %v331_v44 = vld [vmem:[#allocation7 + $0xf0] sm:$0xff]  ;;  %v680_v46 = vld [vmem:[#allocation8 + $0x108] sm:$0xff] }
  0xb0   : > { %v682_v47 = vld [vmem:[#allocation8 + $0x118] sm:$0xff]  ;;  %v681_v50 = vld [vmem:[#allocation8 + $0x110] sm:$0xff]  ;;  %v684_v51 = vld [vmem:[#allocation8 + $0x128] sm:$0xff] }
  0xb1   : > { %1834 = vmatpush1.bf16.msra.mxu0 %v1833_v36  ;;  %v1871_v36 = vpack.c.bf16 %v328_v34, %v326_v33  ;;  %v685_v57 = vld [vmem:[#allocation8 + $0x130] sm:$0xff]  ;;  %v688_v58 = vld [vmem:[#allocation8 + $0x148] sm:$0xff]  ;;  %v690_v59 = vld [vmem:[#allocation8 + $0x158] sm:$0xff] }
  0xb2   : > { %1836 = vmatprep.subr.bf16.mxu0 %v1835_v37  ;;  %v325_v37 = vld [vmem:[#allocation7 + $0xc0] sm:$0xff]  ;;  %v1891_v60 = vpack.c.bf16 %v690_v59, %v688_v58  ;;  %v696_v7 = vld [vmem:[#allocation8 + $0x188] sm:$0xff]  ;;  %v698_v8 = vld [vmem:[#allocation8 + $0x198] sm:$0xff] }
  0xb3   : > { %v1873_v41 = vpack.c.bf16 %v327_v38, %v325_v37  ;;  %v691_v5 = vld [vmem:[#allocation8 + $0x160] sm:$0xff]  ;;  %v700_v13 = vld [vmem:[#allocation8 + $0x1a8] sm:$0xff]  ;;  %v702_v14 = vld [vmem:[#allocation8 + $0x1b8] sm:$0xff] }
  0xb4   : > { %v1903_v16 = vpack.c.bf16 %v702_v14, %v700_v13  ;;  %v704_v19 = vld [vmem:[#allocation8 + $0x1c8] sm:$0xff]  ;;  %v706_v20 = vld [vmem:[#allocation8 + $0x1d8] sm:$0xff]  ;;  %v877_v34 = vld [vmem:[#allocation8 + $0x200] sm:$0xff] }
  0xb5   : > { %1838 = vmatpush1.bf16.msra.mxu0 %v1837_v42  ;;  %v1875_v42 = vpack.c.bf16 %v332_v40, %v330_v39  ;;  %v1907_v22 = vpack.c.bf16 %v706_v20, %v704_v19  ;;  %v708_v25 = vld [vmem:[#allocation8 + $0x1e8] sm:$0xff]  ;;  %v710_v26 = vld [vmem:[#allocation8 + $0x1f8] sm:$0xff]  ;;  %v901_v13 = vld [vmem:[#allocation8 + $0x2c0] sm:$0xff] }
  0xb6   : > { %1840 = vmatprep.subr.bf16.mxu0 %v1839_v43  ;;  %v329_v43 = vld [vmem:[#allocation7 + $0xe0] sm:$0xff]  ;;  %v1911_v28 = vpack.c.bf16 %v710_v26, %v708_v25  ;;  %v878_v32 = vld [vmem:[#allocation8 + $0x208] sm:$0xff]  ;;  %v880_v33 = vld [vmem:[#allocation8 + $0x218] sm:$0xff] }
  0xb7   : > { %v1877_v45 = vpack.c.bf16 %v331_v44, %v329_v43  ;;  %v882_v37 = vld [vmem:[#allocation8 + $0x228] sm:$0xff]  ;;  %v884_v38 = vld [vmem:[#allocation8 + $0x238] sm:$0xff]  ;;  %v903_v14 = vld [vmem:[#allocation8 + $0x2d0] sm:$0xff] }
  0xb8   : > { %v1923_v40 = vpack.c.bf16 %v884_v38, %v882_v37  ;;  %v886_v43 = vld [vmem:[#allocation8 + $0x248] sm:$0xff]  ;;  %v888_v44 = vld [vmem:[#allocation8 + $0x258] sm:$0xff]  ;;  %v905_v19 = vld [vmem:[#allocation8 + $0x2e0] sm:$0xff] }
  0xb9   : > { %1842 = vmatpush1.bf16.msra.mxu0 %v1841_v48  ;;  %v1883_v48 = vpack.c.bf16 %v682_v47, %v680_v46  ;;  %v1927_v46 = vpack.c.bf16 %v888_v44, %v886_v43  ;;  %v885_v47 = vld [vmem:[#allocation8 + $0x240] sm:$0xff]  ;;  %v907_v20 = vld [vmem:[#allocation8 + $0x2f0] sm:$0xff] }
  0xba   : > { %1844 = vmatprep.subr.bf16.mxu0 %v1843_v49  ;;  %v679_v49 = vld [vmem:[#allocation8 + $0x100] sm:$0xff]  ;;  %v1072_v37 = vld [vmem:[#allocation8 + $0x330] sm:$0xff] }
  0xbb   : > { %v1885_v53 = vpack.c.bf16 %v681_v50, %v679_v49  ;;  %v890_v49 = vld [vmem:[#allocation8 + $0x268] sm:$0xff]  ;;  %v892_v50 = vld [vmem:[#allocation8 + $0x278] sm:$0xff]  ;;  %v1074_v44 = vld [vmem:[#allocation8 + $0x340] sm:$0xff] }
  0xbd   : > { %1846 = vmatpush1.bf16.msra.mxu0 %v1845_v52  ;;  %v686_v52 = vld [vmem:[#allocation8 + $0x138] sm:$0xff] }
  0xbe   : > { %1848 = vmatprep.subr.bf16.mxu0 %v1847_v55  ;;  %v1887_v54 = vpack.c.bf16 %v686_v52, %v684_v51  ;;  %v683_v55 = vld [vmem:[#allocation8 + $0x120] sm:$0xff]  ;;  %v1931_v52 = vpack.c.bf16 %v892_v50, %v890_v49 }
 0x173   : > { %v1775_v62 = vpop.f32.mrb[0].mxu0 }
 0x174   : > { %v408_v6 = vpop.f32.mrb[1].mxu0 }
 0x175   : > { %v1879_v9 = vpack.c.bf16 %v1775_v62, %v408_v6  ;;  %514 = vmatmul.mubr.f32.vlgmr.msra.gmra.mrb[2].mxu0 %v408_v6  ;;  %v693_v6 = vld [vmem:[#allocation8 + $0x170] sm:$0xff] }
 0x176   : > { %1850 = vmatpush1.bf16.msra.mxu0 %v1849_v61  ;;  %519 = vmatprep.mubr.f32.mxu0 %v2405_v56  ;;  %v687_v61 = vld [vmem:[#allocation8 + $0x140] sm:$0xff] }
 0x177   : > { %1852 = vmatprep.subr.bf16.mxu0 %v1851_v63  ;;  %v694_v63 = vld [vmem:[#allocation8 + $0x178] sm:$0xff] }
 0x179   : > { %520 = vmatmul.mubr.f32.gmra.mrb[4].mxu0 %v1775_v62  ;;  %v692_v62 = vld [vmem:[#allocation8 + $0x168] sm:$0xff] }
 0x17a   : > { %1854 = vmatpush1.bf16.msra.mxu0 %v1853_v10  ;;  %590 = vmatprep.mubr.f32.mxu0 %v2405_v56  ;;  %v1895_v4 = vpack.c.bf16 %v694_v63, %v692_v62  ;;  %v695_v10 = vld [vmem:[#allocation8 + $0x180] sm:$0xff] }
 0x17b   : > { %1856 = vmatprep.subr.bf16.mxu0 %v1855_v12  ;;  %v697_v12 = vld [vmem:[#allocation8 + $0x190] sm:$0xff] }
 0x17c   : > { %v1901_v15 = vpack.c.bf16 %v697_v12, %v695_v10  ;;  %v904_v10 = vld [vmem:[#allocation8 + $0x2d8] sm:$0xff] }
 0x17e   : > { %1858 = vmatpush1.bf16.msra.mxu0 %v1857_v17  ;;  %v699_v17 = vld [vmem:[#allocation8 + $0x1a0] sm:$0xff] }
 0x17f   : > { %1860 = vmatprep.subr.bf16.mxu0 %v1859_v18  ;;  %v701_v18 = vld [vmem:[#allocation8 + $0x1b0] sm:$0xff] }
 0x180   : > { %v1905_v21 = vpack.c.bf16 %v701_v18, %v699_v17  ;;  %v908_v17 = vld [vmem:[#allocation8 + $0x2f8] sm:$0xff] }
 0x182   : > { %1862 = vmatpush1.bf16.msra.mxu0 %v1861_v23  ;;  %v703_v23 = vld [vmem:[#allocation8 + $0x1c0] sm:$0xff] }
 0x183   : > { %1864 = vmatprep.subr.bf16.mxu0 %v1863_v24  ;;  %v705_v24 = vld [vmem:[#allocation8 + $0x1d0] sm:$0xff] }
 0x184   : > { %v1909_v27 = vpack.c.bf16 %v705_v24, %v703_v23  ;;  %v1069_v23 = vld [vmem:[#allocation8 + $0x318] sm:$0xff] }
 0x186   : > { %1866 = vmatpush1.bf16.msra.mxu0 %v1865_v29  ;;  %v707_v29 = vld [vmem:[#allocation8 + $0x1e0] sm:$0xff] }
 0x187   : > { %1868 = vmatprep.subr.bf16.mxu0 %v1867_v30  ;;  %v709_v30 = vld [vmem:[#allocation8 + $0x1f0] sm:$0xff] }
 0x188   : > { %v1913_v31 = vpack.c.bf16 %v709_v30, %v707_v29  ;;  %v1068_v29 = vld [vmem:[#allocation8 + $0x310] sm:$0xff] }
 0x18a   : > { %1870 = vmatpush1.bf16.msra.mxu0 %v1869_v35  ;;  %v1919_v35 = vpack.c.bf16 %v880_v33, %v878_v32  ;;  %v1073_v32 = vld [vmem:[#allocation8 + $0x338] sm:$0xff] }
 0x18b   : > { %1872 = vmatprep.subr.bf16.mxu0 %v1871_v36  ;;  %v879_v36 = vld [vmem:[#allocation8 + $0x210] sm:$0xff] }
 0x18c   : > { %v1921_v39 = vpack.c.bf16 %v879_v36, %v877_v34  ;;  %1920 = vmatprep.subr.bf16.mxu1 %v1919_v35  ;;  %v1070_v36 = vld [vmem:[#allocation8 + $0x320] sm:$0xff] }
 0x18e   : > { %1874 = vmatpush1.bf16.msra.mxu0 %v1873_v41  ;;  %v881_v41 = vld [vmem:[#allocation8 + $0x220] sm:$0xff]  ;;  %1922 = vmatpush1.bf16.msra.mxu1 %v1921_v39  ;;  %v1075_v39 = vld [vmem:[#allocation8 + $0x348] sm:$0xff] }
 0x18f   : > { %1876 = vmatprep.subr.bf16.mxu0 %v1875_v42  ;;  %v883_v42 = vld [vmem:[#allocation8 + $0x230] sm:$0xff]  ;;  %1924 = vmatprep.subr.bf16.mxu1 %v1923_v40  ;;  %v1077_v40 = vld [vmem:[#allocation8 + $0x358] sm:$0xff] }
 0x190   : > { %v1963_v43 = vpack.c.bf16 %v1077_v40, %v1075_v39  ;;  %v1274_v39 = vld [vmem:[#allocation8 + $0x450] sm:$0xff] }
 0x192   : > { %1878 = vmatpush1.bf16.msra.mxu0 %v1877_v45  ;;  %v1925_v45 = vpack.c.bf16 %v883_v42, %v881_v41  ;;  %v1961_v42 = vpack.c.bf16 %v1072_v37, %v1070_v36 }
 0x193   : > { %1880 = vmatprep.subr.bf16.mxu0 %v1879_v9 }
 0x194   : > { %1926 = vmatpush1.bf16.msra.mxu1 %v1925_v45  ;;  %v1076_v45 = vld [vmem:[#allocation8 + $0x350] sm:$0xff] }
 0x195   : > { %591 = vmatmul.mubr.f32.vlgmr.msra.gmra.mrb[2].mxu0 %v2660_v0  ;;  %v1889_v0 = vpack.c.bf16 %v685_v57, %v683_v55  ;;  %1928 = vmatprep.subr.bf16.mxu1 %v1927_v46  ;;  %v894_v55 = vld [vmem:[#allocation8 + $0x288] sm:$0xff]  ;;  %v896_v57 = vld [vmem:[#allocation8 + $0x298] sm:$0xff]  ;;  %v1965_v49 = vpack.c.bf16 %v1076_v45, %v1074_v44 }
 0x196   : > { %1882 = vmatpush3.bf16.msra.mxu0 %v1879_v9  ;;  %596 = vmatprep.mubr.f32.mxu0 %v2405_v56  ;;  %v1899_v9 = vpack.c.bf16 %v698_v8, %v696_v7  ;;  %v1935_v59 = vpack.c.bf16 %v896_v57, %v894_v55  ;;  %v793_v8 = vld [vmem:[#allocation5 + $0x10] sm:$0xff]  ;;  %v1079_v46 = vld [vmem:[#allocation8 + $0x368] sm:$0xff]  ;;  %v1085_v55 = vld [vmem:[#allocation8 + $0x398] sm:$0xff] }
 0x197   : > { %1884 = vmatprep.subr.bf16.mxu0 %v1883_v48  ;;  %v887_v48 = vld [vmem:[#allocation8 + $0x250] sm:$0xff] }
 0x198   : > { %v1929_v51 = vpack.c.bf16 %v887_v48, %v885_v47  ;;  %v1081_v47 = vld [vmem:[#allocation8 + $0x378] sm:$0xff]  ;;  %v1180_v48 = vld [vmem:[#allocation5 + $0x20] sm:$0xff] }
 0x199   : > { %597 = vmatmul.mubr.f32.gmra.mrb[4].mxu0 %v2662_v1  ;;  %v689_v1 = vld [vmem:[#allocation8 + $0x150] sm:$0xff]  ;;  %v1967_v50 = vpack.c.bf16 %v1081_v47, %v1079_v46  ;;  %v1276_v46 = vld [vmem:[#allocation8 + $0x460] sm:$0xff] }
 0x19a   : > { %1780 = vmatprep.mubr.msk.f32.mxu0 %vm335_vm0, %v2664_v2  ;;  %v1893_v2 = vpack.c.bf16 %v689_v1, %v687_v61  ;;  %1930 = vmatpush1.bf16.msra.mxu1 %v1929_v51  ;;  %v898_v61 = vld [vmem:[#allocation8 + $0x2a8] sm:$0xff]  ;;  %v900_v1 = vld [vmem:[#allocation8 + $0x2b8] sm:$0xff]  ;;  %v1078_v51 = vld [vmem:[#allocation8 + $0x360] sm:$0xff] }
 0x19b   : > { %1932 = vmatprep.subr.bf16.mxu1 %v1931_v52  ;;  %v1939_v63 = vpack.c.bf16 %v900_v1, %v898_v61  ;;  %v1080_v52 = vld [vmem:[#allocation8 + $0x370] sm:$0xff]  ;;  %v1089_v61 = vld [vmem:[#allocation8 + $0x3b8] sm:$0xff] }
 0x19c   : > { %v1969_v57 = vpack.c.bf16 %v1080_v52, %v1078_v51  ;;  %v1278_v47 = vld [vmem:[#allocation8 + $0x470] sm:$0xff]  ;;  %v1280_v52 = vld [vmem:[#allocation8 + $0x480] sm:$0xff] }
 0x19d   : > { %1781 = vmatmul.mubr.msk.f32.vlgmr.msra.gmra.mrb[6].mxu0 %vm335_vm0, %v2674_v11  ;;  %v1897_v11 = vpack.c.bf16 %v693_v6, %v691_v5 }
 0x19e   : > { %1886 = vmatpush1.bf16.msra.mxu0 %v1885_v53  ;;  %775 = vmatprep.mubr.f32.mxu0 %v2405_v56  ;;  %v889_v53 = vld [vmem:[#allocation8 + $0x260] sm:$0xff] }
 0x19f   : > { %1888 = vmatprep.subr.bf16.mxu0 %v1887_v54  ;;  %v891_v54 = vld [vmem:[#allocation8 + $0x270] sm:$0xff] }
 0x1a0   : > { %v1933_v58 = vpack.c.bf16 %v891_v54, %v889_v53  ;;  %v2710_v53 = vld [vmem:[#allocation5 + $0x28] sm:$0xff]  ;;  %v1083_v54 = vld [vmem:[#allocation8 + $0x388] sm:$0xff] }
 0x1a2   : > { %1890 = vmatpush1.bf16.msra.mxu0 %v1889_v0  ;;  %v893_v0 = vld [vmem:[#allocation8 + $0x280] sm:$0xff]  ;;  %1934 = vmatpush1.bf16.msra.mxu1 %v1933_v58  ;;  %v1971_v58 = vpack.c.bf16 %v1085_v55, %v1083_v54  ;;  %v1282_v54 = vld [vmem:[#allocation8 + $0x490] sm:$0xff]  ;;  %v1285_v55 = vld [vmem:[#allocation8 + $0x4a8] sm:$0xff] }
 0x1a3   : > { %1892 = vmatprep.subr.bf16.mxu0 %v1891_v60  ;;  %v895_v60 = vld [vmem:[#allocation8 + $0x290] sm:$0xff]  ;;  %1936 = vmatprep.subr.bf16.mxu1 %v1935_v59  ;;  %v1082_v59 = vld [vmem:[#allocation8 + $0x380] sm:$0xff] }
 0x1a4   : > { %v1937_v62 = vpack.c.bf16 %v895_v60, %v893_v0  ;;  %v1084_v0 = vld [vmem:[#allocation8 + $0x390] sm:$0xff]  ;;  %v1087_v60 = vld [vmem:[#allocation8 + $0x3a8] sm:$0xff] }
 0x1a5   : > { %v1975_v1 = vpack.c.bf16 %v1089_v61, %v1087_v60  ;;  %v1286_v60 = vld [vmem:[#allocation8 + $0x4b0] sm:$0xff]  ;;  %v1289_v61 = vld [vmem:[#allocation8 + $0x4c8] sm:$0xff] }
 0x1a6   : > { %1894 = vmatpush1.bf16.msra.mxu0 %v1893_v2  ;;  %v897_v2 = vld [vmem:[#allocation8 + $0x2a0] sm:$0xff]  ;;  %1938 = vmatpush1.bf16.msra.mxu1 %v1937_v62 }
 0x1a7   : > { %1896 = vmatprep.subr.bf16.mxu0 %v1895_v4  ;;  %v899_v4 = vld [vmem:[#allocation8 + $0x2b0] sm:$0xff]  ;;  %1940 = vmatprep.subr.bf16.mxu1 %v1939_v63  ;;  %v1086_v62 = vld [vmem:[#allocation8 + $0x3a0] sm:$0xff] }
 0x1a8   : > { %v1941_v5 = vpack.c.bf16 %v899_v4, %v897_v2  ;;  %v1088_v63 = vld [vmem:[#allocation8 + $0x3b0] sm:$0xff]  ;;  %v1091_v2 = vld [vmem:[#allocation8 + $0x3c8] sm:$0xff]  ;;  %v1093_v4 = vld [vmem:[#allocation8 + $0x3d8] sm:$0xff] }
 0x1aa   : > { %1898 = vmatpush1.bf16.msra.mxu0 %v1897_v11  ;;  %1942 = vmatpush1.bf16.msra.mxu1 %v1941_v5  ;;  %v794_v11 = vld [vmem:[#allocation5 + $0x18] sm:$0xff]  ;;  %v1977_v5 = vpack.c.bf16 %v1088_v63, %v1086_v62  ;;  %v1288_v63 = vld [vmem:[#allocation8 + $0x4c0] sm:$0xff] }
 0x1ab   : > { %1900 = vmatprep.subr.bf16.mxu0 %v1899_v9  ;;  %v902_v9 = vld [vmem:[#allocation8 + $0x2c8] sm:$0xff] }
 0x1ac   : > { %v1943_v12 = vpack.c.bf16 %v904_v10, %v902_v9  ;;  %v1097_v9 = vld [vmem:[#allocation8 + $0x3f8] sm:$0xff] }
 0x1ae   : > { %1902 = vmatpush1.bf16.msra.mxu0 %v1901_v15  ;;  %v1945_v15 = vpack.c.bf16 %v903_v14, %v901_v13  ;;  %1944 = vmatprep.subr.bf16.mxu1 %v1943_v12  ;;  %v1094_v13 = vld [vmem:[#allocation8 + $0x3e0] sm:$0xff]  ;;  %v1096_v14 = vld [vmem:[#allocation8 + $0x3f0] sm:$0xff] }
 0x1af   : > { %1904 = vmatprep.subr.bf16.mxu0 %v1903_v16  ;;  %v906_v16 = vld [vmem:[#allocation8 + $0x2e8] sm:$0xff] }
 0x1b0   : > { %1946 = vmatpush1.bf16.msra.mxu1 %v1945_v15  ;;  %v1947_v18 = vpack.c.bf16 %v908_v17, %v906_v16  ;;  %v1985_v15 = vpack.c.bf16 %v1096_v14, %v1094_v13  ;;  %v1265_v16 = vld [vmem:[#allocation8 + $0x408] sm:$0xff]  ;;  %v1267_v17 = vld [vmem:[#allocation8 + $0x418] sm:$0xff]  ;;  %v1453_v13 = vld [vmem:[#allocation8 + $0x500] sm:$0xff] }
 0x1b1   : > { %v1455_v14 = vld [vmem:[#allocation8 + $0x510] sm:$0xff] }
 0x1b2   : > { %1906 = vmatpush1.bf16.msra.mxu0 %v1905_v21  ;;  %v1949_v21 = vpack.c.bf16 %v907_v20, %v905_v19  ;;  %1948 = vmatprep.subr.bf16.mxu1 %v1947_v18  ;;  %v1991_v18 = vpack.c.bf16 %v1267_v17, %v1265_v16  ;;  %v1264_v19 = vld [vmem:[#allocation8 + $0x400] sm:$0xff]  ;;  %v1266_v20 = vld [vmem:[#allocation8 + $0x410] sm:$0xff]  ;;  %v1460_v16 = vld [vmem:[#allocation8 + $0x538] sm:$0xff]  ;;  %v2029_v17 = vpack.c.bf16 %v1455_v14, %v1453_v13 }
 0x1b3   : > { %1908 = vmatprep.subr.bf16.mxu0 %v1907_v22  ;;  %v1067_v22 = vld [vmem:[#allocation8 + $0x308] sm:$0xff] }
 0x1b4   : > { %1950 = vmatpush1.bf16.msra.mxu1 %v1949_v21  ;;  %v1955_v24 = vpack.c.bf16 %v1069_v23, %v1067_v22  ;;  %v1269_v21 = vld [vmem:[#allocation8 + $0x428] sm:$0xff]  ;;  %v1271_v22 = vld [vmem:[#allocation8 + $0x438] sm:$0xff]  ;;  %v1993_v23 = vpack.c.bf16 %v1266_v20, %v1264_v19  ;;  %v1457_v19 = vld [vmem:[#allocation8 + $0x520] sm:$0xff] }
 0x1b5   : > { %v1459_v20 = vld [vmem:[#allocation8 + $0x530] sm:$0xff] }
 0x1b6   : > { %1910 = vmatpush1.bf16.msra.mxu0 %v1909_v27  ;;  %1956 = vmatprep.subr.bf16.mxu1 %v1955_v24 }
 0x1b7   : > { %1912 = vmatprep.subr.bf16.mxu0 %v1911_v28  ;;  %v1066_v28 = vld [vmem:[#allocation8 + $0x300] sm:$0xff] }
 0x1b8   : > { %v1957_v33 = vpack.c.bf16 %v1068_v29, %v1066_v28  ;;  %v1995_v28 = vpack.c.bf16 %v1271_v22, %v1269_v21  ;;  %v1268_v29 = vld [vmem:[#allocation8 + $0x420] sm:$0xff]  ;;  %v1462_v21 = vld [vmem:[#allocation8 + $0x548] sm:$0xff]  ;;  %v1464_v22 = vld [vmem:[#allocation8 + $0x558] sm:$0xff] }
 0x1ba   : > { %1914 = vmatpush1.bf16.msra.mxu0 %v1913_v31  ;;  %v1071_v31 = vld [vmem:[#allocation8 + $0x328] sm:$0xff] }
 0x1bb   : > { %1916 = vmatprep.subr.bf16.mxu0 %v2668_v3  ;;  %v1959_v35 = vpack.c.bf16 %v1073_v32, %v1071_v31  ;;  %v1270_v31 = vld [vmem:[#allocation8 + $0x430] sm:$0xff] }
 0x270   : > { %v1782_v6 = vpop.f32.mrb[6].mxu0 }
 0x271   : > { %v669_v7 = vpop.f32.mrb[7].mxu0 }
 0x272   : > { %776 = vmatmul.mubr.f32.vlgmr.msra.gmra.mrb[2].mxu0 %v669_v7  ;;  %v1090_v7 = vld [vmem:[#allocation8 + $0x3c0] sm:$0xff] }
 0x273   : > { %1918 = vmatpush3.bf16.msra.mxu0 %v2668_v3  ;;  %781 = vmatprep.mubr.f32.mxu0 %v2405_v56 }
 0x276   : > { %782 = vmatmul.mubr.f32.gmra.mrb[4].mxu0 %v1782_v6  ;;  %v1979_v6 = vpack.c.bf16 %v1093_v4, %v1091_v2  ;;  %v1293_v2 = vld [vmem:[#allocation8 + $0x4e8] sm:$0xff]  ;;  %v1295_v4 = vld [vmem:[#allocation8 + $0x4f8] sm:$0xff] }
 0x277   : > { %1787 = vmatprep.mubr.msk.f32.mxu0 %vm335_vm0, %v793_v8 }
 0x27a   : > { %1788 = vmatmul.mubr.msk.f32.vlgmr.msra.gmra.mrb[8].mxu0 %vm335_vm0, %v794_v11 }
 0x27b   : > { %1794 = vmatprep.mubr.msk.f32.mxu0 %vm335_vm0, %v793_v8  ;;  %v1092_v8 = vld [vmem:[#allocation8 + $0x3d0] sm:$0xff] }
 0x27c   : > { %v1981_v10 = vpack.c.bf16 %v1092_v8, %v1090_v7  ;;  %v1292_v7 = vld [vmem:[#allocation8 + $0x4e0] sm:$0xff]  ;;  %v1294_v8 = vld [vmem:[#allocation8 + $0x4f0] sm:$0xff] }
 0x345   : > { %v2696_v25 = vpop.f32.mrb[2].mxu0 }
 0x346   : > { %v2698_v26 = vpop.f32.mrb[3].mxu0 }
 0x349   : > { %v2700_v27 = vpop.f32.mrb[4].mxu0 }
 0x34a   : > { %v2702_v30 = vpop.f32.mrb[5].mxu0 }
 0x34d   : > { %v1789_v34 = vpop.f32.mrb[8].mxu0 }
 0x34e   : > { %v867_v38 = vpop.f32.mrb[9].mxu0 }
 0x34f   : > { %v1951_v41 = vpack.c.bf16 %v1789_v34, %v867_v38  ;;  %974 = vmatmul.mubr.f32.vlgmr.msra.gmra.mrb[0].mxu1 %v867_v38  ;;  %v1272_v38 = vld [vmem:[#allocation8 + $0x440] sm:$0xff] }
 0x350   : > { %979 = vmatprep.mubr.f32.mxu1 %v2405_v56  ;;  %1958 = vmatpush1.bf16.msra.mxu1 %v1957_v33  ;;  %v1273_v33 = vld [vmem:[#allocation8 + $0x448] sm:$0xff]  ;;  %v2001_v44 = vpack.c.bf16 %v1274_v39, %v1272_v38  ;;  %v1472_v39 = vld [vmem:[#allocation8 + $0x598] sm:$0xff] }
 0x351   : > { %1952 = vmatprep.subr.bf16.mxu0 %v1951_v41  ;;  %1960 = vmatprep.subr.bf16.mxu1 %v1959_v35  ;;  %v1997_v35 = vpack.c.bf16 %v1270_v31, %v1268_v29  ;;  %v1463_v29 = vld [vmem:[#allocation8 + $0x550] sm:$0xff]  ;;  %v1466_v31 = vld [vmem:[#allocation8 + $0x568] sm:$0xff] }
 0x352   : > { %1954 = vmatpush3.bf16.msra.mxu0 %v1951_v41  ;;  %v1277_v41 = vld [vmem:[#allocation8 + $0x468] sm:$0xff] }
 0x353   : > { %980 = vmatmul.mubr.f32.gmra.mrb[2].mxu1 %v1789_v34  ;;  %1988 = vmatprep.subr.bf16.mxu0 %v2668_v3  ;;  %v1275_v34 = vld [vmem:[#allocation8 + $0x458] sm:$0xff]  ;;  %v1470_v38 = vld [vmem:[#allocation8 + $0x588] sm:$0xff] }
 0x354   : > { %1962 = vmatpush1.bf16.msra.mxu1 %v1961_v42  ;;  %1162 = vmatprep.mubr.f32.mxu1 %v2405_v56  ;;  %v1999_v37 = vpack.c.bf16 %v1275_v34, %v1273_v33  ;;  %v1279_v42 = vld [vmem:[#allocation8 + $0x478] sm:$0xff] }
 0x355   : > { %1795 = vmatmul.mubr.msk.f32.vlgmr.msra.gmra.mrb[10].mxu0 %vm335_vm0, %v794_v11  ;;  %1964 = vmatprep.subr.bf16.mxu1 %v1963_v43  ;;  %v1095_v11 = vld [vmem:[#allocation8 + $0x3e8] sm:$0xff]  ;;  %v2003_v45 = vpack.c.bf16 %v1279_v42, %v1277_v41  ;;  %v2043_v41 = vpack.c.bf16 %v1472_v39, %v1470_v38  ;;  %v1469_v42 = vld [vmem:[#allocation8 + $0x580] sm:$0xff] }
 0x356   : > { %1990 = vmatpush3.bf16.msra.mxu0 %v2668_v3  ;;  %1801 = vmatprep.mubr.msk.f32.mxu0 %vm335_vm0, %v1180_v48  ;;  %v1973_v3 = vpack.c.bf16 %v1084_v0, %v1082_v59  ;;  %v1983_v12 = vpack.c.bf16 %v1097_v9, %v1095_v11  ;;  %v1284_v0 = vld [vmem:[#allocation8 + $0x4a0] sm:$0xff]  ;;  %v1454_v11 = vld [vmem:[#allocation8 + $0x508] sm:$0xff]  ;;  %v1456_v9 = vld [vmem:[#allocation8 + $0x518] sm:$0xff] }
 0x358   : > { %1966 = vmatpush1.bf16.msra.mxu1 %v1965_v49  ;;  %v1283_v49 = vld [vmem:[#allocation8 + $0x498] sm:$0xff] }
 0x359   : > { %1802 = vmatmul.mubr.msk.f32.vlgmr.msra.gmra.mrb[12].mxu0 %vm335_vm0, %v2710_v53  ;;  %1968 = vmatprep.subr.bf16.mxu1 %v1967_v50  ;;  %v2005_v50 = vpack.c.bf16 %v1278_v47, %v1276_v46  ;;  %v1473_v47 = vld [vmem:[#allocation8 + $0x5a0] sm:$0xff] }
 0x35a   : > { %1808 = vmatprep.mubr.msk.f32.mxu0 %vm335_vm0, %v1180_v48  ;;  %v1281_v48 = vld [vmem:[#allocation8 + $0x488] sm:$0xff] }
 0x35b   : > { %v2007_v51 = vpack.c.bf16 %v1283_v49, %v1281_v48  ;;  %v1475_v48 = vld [vmem:[#allocation8 + $0x5b0] sm:$0xff]  ;;  %v1478_v49 = vld [vmem:[#allocation8 + $0x5c8] sm:$0xff] }
 0x35c   : > { %1970 = vmatpush1.bf16.msra.mxu1 %v1969_v57  ;;  %v1287_v57 = vld [vmem:[#allocation8 + $0x4b8] sm:$0xff] }
 0x35d   : > { %1972 = vmatprep.subr.bf16.mxu1 %v1971_v58  ;;  %v2009_v58 = vpack.c.bf16 %v1282_v54, %v1280_v52  ;;  %v2011_v59 = vpack.c.bf16 %v1287_v57, %v1285_v55  ;;  %v1477_v54 = vld [vmem:[#allocation8 + $0x5c0] sm:$0xff]  ;;  %v1479_v55 = vld [vmem:[#allocation8 + $0x5d0] sm:$0xff]  ;;  %v1482_v57 = vld [vmem:[#allocation8 + $0x5e8] sm:$0xff] }
 0x360   : > { %1974 = vmatpush1.bf16.msra.mxu1 %v1973_v3  ;;  %v1291_v3 = vld [vmem:[#allocation8 + $0x4d8] sm:$0xff] }
 0x361   : > { %1976 = vmatprep.subr.bf16.mxu1 %v1975_v1  ;;  %v2013_v1 = vpack.c.bf16 %v1286_v60, %v1284_v0  ;;  %v2015_v62 = vpack.c.bf16 %v1291_v3, %v1289_v61  ;;  %v1481_v60 = vld [vmem:[#allocation8 + $0x5e0] sm:$0xff]  ;;  %v1483_v61 = vld [vmem:[#allocation8 + $0x5f0] sm:$0xff] }
 0x362   : > { %v2057_v3 = vpack.c.bf16 %v1483_v61, %v1481_v60 }
 0x364   : > { %1978 = vmatpush1.bf16.msra.mxu1 %v1977_v5 }
 0x365   : > { %1980 = vmatprep.subr.bf16.mxu1 %v1979_v6  ;;  %v2019_v6 = vpack.c.bf16 %v1295_v4, %v1293_v2  ;;  %v1566_v4 = vld [vmem:[#allocation10] sm:$0x3] }
 0x368   : > { %1982 = vmatpush1.bf16.msra.mxu1 %v1981_v10  ;;  %v2021_v10 = vpack.c.bf16 %v1294_v8, %v1292_v7 }
 0x369   : > { %1984 = vmatprep.subr.bf16.mxu1 %v1983_v12  ;;  %v2027_v12 = vpack.c.bf16 %v1456_v9, %v1454_v11 }
 0x36c   : > { %1986 = vmatpush1.bf16.msra.mxu1 %v1985_v15  ;;  %v1458_v15 = vld [vmem:[#allocation8 + $0x528] sm:$0xff] }
 0x36d   : > { %1992 = vmatprep.subr.bf16.mxu1 %v1991_v18  ;;  %v2031_v18 = vpack.c.bf16 %v1460_v16, %v1458_v15 }
 0x428   : > { %v1796_v24 = vpop.f32.mrb[10].mxu0 }
 0x429   : > { %v1056_v32 = vpop.f32.mrb[11].mxu0 }
 0x42a   : > { %1163 = vmatmul.mubr.f32.vlgmr.msra.gmra.mrb[0].mxu1 %v1056_v32  ;;  %v1468_v32 = vld [vmem:[#allocation8 + $0x578] sm:$0xff] }
 0x42b   : > { %1994 = vmatpush1.bf16.msra.mxu1 %v1993_v23  ;;  %1168 = vmatprep.mubr.f32.mxu1 %v2405_v56  ;;  %v2033_v23 = vpack.c.bf16 %v1459_v20, %v1457_v19  ;;  %v2039_v34 = vpack.c.bf16 %v1468_v32, %v1466_v31 }
 0x42c   : > { %v2716_v36 = vpop.f32.mrb[12].mxu0  ;;  %1996 = vmatprep.subr.bf16.mxu1 %v1995_v28  ;;  %v1461_v28 = vld [vmem:[#allocation8 + $0x540] sm:$0xff] }
 0x42d   : > { %v2718_v40 = vpop.f32.mrb[13].mxu0  ;;  %v2037_v33 = vpack.c.bf16 %v1463_v29, %v1461_v28 }
 0x42e   : > { %v2023_v43 = vpack.c.bf16 %v2716_v36, %v2718_v40  ;;  %1169 = vmatmul.mubr.f32.gmra.mrb[2].mxu1 %v1796_v24  ;;  %v2035_v24 = vpack.c.bf16 %v1464_v22, %v1462_v21 }
 0x42f   : > { %1998 = vmatpush1.bf16.msra.mxu1 %v1997_v35  ;;  %1360 = vmatprep.mubr.f32.mxu1 %v2405_v56  ;;  %v1465_v35 = vld [vmem:[#allocation8 + $0x560] sm:$0xff] }
 0x430   : > { %2024 = vmatprep.subr.bf16.mxu0 %v2023_v43  ;;  %2000 = vmatprep.subr.bf16.mxu1 %v1999_v37  ;;  %v1467_v37 = vld [vmem:[#allocation8 + $0x570] sm:$0xff] }
 0x431   : > { %2026 = vmatpush3.bf16.msra.mxu0 %v2023_v43  ;;  %v1471_v43 = vld [vmem:[#allocation8 + $0x590] sm:$0xff] }
 0x433   : > { %2002 = vmatpush1.bf16.msra.mxu1 %v2001_v44  ;;  %v1474_v44 = vld [vmem:[#allocation8 + $0x5a8] sm:$0xff] }
 0x434   : > { %1809 = vmatmul.mubr.msk.f32.vlgmr.msra.gmra.mrb[14].mxu0 %vm335_vm0, %v2710_v53  ;;  %2004 = vmatprep.subr.bf16.mxu1 %v2003_v45  ;;  %v1290_v53 = vld [vmem:[#allocation8 + $0x4d0] sm:$0xff]  ;;  %v1476_v45 = vld [vmem:[#allocation8 + $0x5b8] sm:$0xff] }
 0x435   : > { %v2017_v5 = vpack.c.bf16 %v1290_v53, %v1288_v63  ;;  %v2047_v46 = vpack.c.bf16 %v1476_v45, %v1474_v44  ;;  %v1568_v63 = vlaneseq }
 0x437   : > { %2006 = vmatpush1.bf16.msra.mxu1 %v2005_v50  ;;  %v1480_v50 = vld [vmem:[#allocation8 + $0x5d8] sm:$0xff]  ;;  %v1569_v53 = vshrl.u32 %v1568_v63, 7 }
 0x438   : > { %2008 = vmatprep.subr.bf16.mxu1 %v2007_v51  ;;  %v2049_v51 = vpack.c.bf16 %v1475_v48, %v1473_v47  ;;  %v2051_v52 = vpack.c.bf16 %v1480_v50, %v1478_v49 }
 0x439   : > { %v1570_v2 = vsub.s32 0, %v1569_v53 }
 0x43b   : > { %2010 = vmatpush1.bf16.msra.mxu1 %v2009_v58  ;;  %v1484_v58 = vld [vmem:[#allocation8 + $0x5f8] sm:$0xff] }
 0x43c   : > { %2012 = vmatprep.subr.bf16.mxu1 %v2011_v59  ;;  %v2053_v59 = vpack.c.bf16 %v1479_v55, %v1477_v54  ;;  %v2055_v0 = vpack.c.bf16 %v1484_v58, %v1482_v57 }
 0x43f   : > { %2014 = vmatpush1.bf16.msra.mxu1 %v2013_v1 }
 0x440   : > { %2016 = vmatprep.subr.bf16.mxu1 %v2015_v62 }
 0x443   : > { %2018 = vmatpush1.bf16.msra.mxu1 %v2017_v5  ;;  %v1574_v5 = vsub.s32 1, %v1569_v53 }
 0x444   : > { %2020 = vmatprep.subr.bf16.mxu1 %v2019_v6  ;;  %v1571_v6 = vrot.slane %v1566_v4, %v1570_v2 }
 0x445   : > { %v1575_v8 = vrot.slane %v1566_v4, %v1574_v5 }
 0x447   : > { %2022 = vmatpush1.bf16.msra.mxu1 %v2021_v10 }
 0x448   : > { %2028 = vmatprep.subr.bf16.mxu1 %v2027_v12 }
 0x44a   : > { %1361 = vmatmul.mubr.f32.vlgmr.msra.gmra.mrb[0].mxu1 %v2718_v40  ;;  %v2041_v40 = vpack.c.bf16 %v1467_v37, %v1465_v35 }
 0x44b   : > { %1366 = vmatprep.mubr.f32.mxu1 %v2405_v56  ;;  %2030 = vmatpush1.bf16.msra.mxu1 %v2029_v17 }
 0x44c   : > { %2032 = vmatprep.subr.bf16.mxu1 %v2031_v18 }
 0x44e   : > { %1367 = vmatmul.mubr.f32.gmra.mrb[2].mxu1 %v2716_v36  ;;  %v2045_v36 = vpack.c.bf16 %v1471_v43, %v1469_v42 }
 0x44f   : > { %2034 = vmatpush1.bf16.msra.mxu1 %v2033_v23  ;;  %1549 = vmatprep.mubr.f32.mxu1 %v2405_v56 }
 0x450   : > { %2036 = vmatprep.subr.bf16.mxu1 %v2035_v24 }
 0x453   : > { %2038 = vmatpush1.bf16.msra.mxu1 %v2037_v33 }
 0x454   : > { %2040 = vmatprep.subr.bf16.mxu1 %v2039_v34 }
 0x457   : > { %2042 = vmatpush1.bf16.msra.mxu1 %v2041_v40 }
 0x458   : > { %2044 = vmatprep.subr.bf16.mxu1 %v2043_v41 }
 0x45b   : > { %2046 = vmatpush1.bf16.msra.mxu1 %v2045_v36 }
 0x45c   : > { %2048 = vmatprep.subr.bf16.mxu1 %v2047_v46 }
 0x45f   : > { %2050 = vmatpush1.bf16.msra.mxu1 %v2049_v51 }
 0x460   : > { %2052 = vmatprep.subr.bf16.mxu1 %v2051_v52 }
 0x463   : > { %2054 = vmatpush1.bf16.msra.mxu1 %v2053_v59 }
 0x464   : > { %2056 = vmatprep.subr.bf16.mxu1 %v2055_v0 }
 0x467   : > { %2058 = vmatpush1.bf16.msra.mxu1 %v2057_v3 }
 0x507   : > { %v1810_v1 = vpop.f32.mrb[14].mxu0 }
 0x508   : > { %v1443_v62 = vpop.f32.mrb[15].mxu0 }
 0x509   : > { %1550 = vmatmul.mubr.f32.vlgmr.msra.gmra.mrb[0].mxu1 %v1443_v62 }
 0x50a   : > { %1555 = vmatprep.mubr.f32.mxu1 %v2405_v56 }
 0x50d   : > { %1556 = vmatmul.mubr.f32.gmra.mrb[2].mxu1 %v1810_v1 }
 0x5dc   : > { %v1551_v7 = vpop.f32.mrb[0].mxu1 }
 0x5dd   : > { %v2059_v11 = vadd.f32 %v1551_v7, %v2696_v25  ;;  %v1553_v9 = vpop.f32.mrb[1].mxu1 }
 0x5de   : > { %v2060_v10 = vadd.f32 %v1553_v9, %v2698_v26 }
 0x5df   : > { %v1578_v12 = vadd.f32 %v2059_v11, %v1571_v6 }
 0x5e0   : > { %v1579_v56 = vadd.f32 %v2060_v10, %v1575_v8  ;;  %v1557_v13 = vpop.f32.mrb[2].mxu1 }
 0x5e1   : > { %1582 = vst [vmem:[%s297_s26] sm:$0xff] %v1578_v12  ;;  %v2061_v14 = vadd.f32 %v1557_v13, %v2700_v27  ;;  %v1559_v15 = vpop.f32.mrb[3].mxu1 }
 0x5e2   : > { %1583 = vst [vmem:[%s297_s26 + $0x8] sm:$0xff] %v1579_v56  ;;  %v2062_v25 = vadd.f32 %v1559_v15, %v2702_v30 }
 0x5e3   : > { %v1580_v26 = vadd.f32 %v2061_v14, %v1571_v6 }
 0x5e4   : > { %v1581_v16 = vadd.f32 %v2062_v25, %v1575_v8 }
 0x5e5   : > { %1584 = vst [vmem:[%s297_s26 + $0x10] sm:$0xff] %v1580_v26 }
 0x5e6   : > { %1585 = vst [vmem:[%s297_s26 + $0x18] sm:$0xff] %v1581_v16 }
 0x5e7   : > { %2333 = shalt.err (!%p2330_p13)
}
 0x5e8   : > { %s2334_s16 = scalar_lea.hbm %s2741_s27, 512  ;;  %s2338_s11 = scalar_lea.hbm %s2790_s5, 1024 }
 0x5e9   : > { %p2335_p0 = scmp.ne.s32.totalorder %s2741_s27, %s2334_s16  ;;  %p2339_p11 = scmp.lt.u32.totalorder %s2741_s27, %s2790_s5 }
 0x5ea   : > { %p2340_p2 = scmp.lt.u32.totalorder %s2338_s11, %s2334_s16  ;;  %p2342_p8 = scmp.lt.u32.totalorder %s2334_s16, %s2741_s27 }
 0x5eb   : > { %p2336_p5 = pnand %p2335_p0, %p2589_p6 }
 0x5ec   : > { %p2341_p4 = por %p2340_p2, %p2339_p11 }
 0x5ed   : > { %p2337_p1 = pneg %p2336_p5 }
 0x5ee   : > { %p2343_p10 = por %p2342_p8, %p2341_p4 }
 0x5f0   : > { %p2344_p12 = pnand %p2343_p10, %p2337_p1 }
 0x5f2   : > { %2347 = shalt.err (!%p2344_p12)
}
 0x5f3   : > { %s2407_s23 = smov 256   ;;  %s2408_s28 = smov 512  }
 0x5f4   : > { %s2409_s7 = smov 16  }
 0x5f5   : > { %2101 = dma.vmem_to_hbm [thread:$0]  (%p2589_p6), %s2735_s17, 512, %s2741_s27, %s1587_s22, %s2407_s23, %s2408_s28, %s2409_s7  }
 0x5f6 PF: > { %s1615_s6 = sand.u32 1, %s2382_s18   ;;  %p2810_p3 = scmp.ne.s32.totalorder %s2796_s25, 0 }
 0x5f7   : > { %p2811_p7 = scmp.ge.s32.totalorder %s2394_s21, 2  ;;  %s1616_s30 = scalar_lea.sflag [#allocation4], %s1615_s6 }
 0x5f9   : > { %p2121_p9 = pnand %p2811_p7, %p2810_p3 }
 0x5fb   : > { %2377 = dma.done.wait (!%p2121_p9), %s1616_s30, 512  }
 0x5fc   : > { %2379 = vsyncadd (!%p2121_p9), %s1616_s30, 4294966784  ;;  %p20_p13 = scmp.ge.s32.totalorder %s2579_s12, 4   ;;  %s2812_s18 = smov %s2386_s19 }
 0x5fd   : > { %s2813_s19 = smov %s2390_s20  ;;  %s2814_s20 = smov %s2595_s9 }
 0x5fe   : > { %s2815_s21 = smov %s2579_s12  ;;  %22 = sbr.rel (!%p20_p13) target bundleno = 7 (0x7), region = 108 }
 0x605   :  { %1621 = vsyncpa [#allocation3], 1 }
 0x606   :  { %1623 = vsyncpa [#allocation3 + $0x1], 1 }
 0x607   :  { %1624 = vsyncpa [#allocation6], 1 }
 0x608   :  { %1625 = vsyncpa [#allocation9], 1 }
 0x609   :  { %1626 = vsyncpa [#allocation4], 1 }
 0x60a   :  { %1628 = vsyncpa [#allocation4 + $0x1], 1 }

</bundles_post_ra>
